<compile_context>
chip_gen: v7x
topology: tpu7x:2x2x1
jax: 0.10.0
libtpu: 0.0.40
codegen_flags: <defaults>
</compile_context>

<pallas_src>
import functools

import jax
import jax.numpy as jnp
from jax.experimental import pallas as pl
from jax.experimental.pallas import tpu as pltpu


# --------------------------------------------------------------------------- #
# Kernels
# --------------------------------------------------------------------------- #
def layernorm_kernel(x_ref, gamma_ref, beta_ref, o_ref, *, eps, inv_dm1,
                     lowp_epilogue):
    """Simple streaming path: one logical row per kernel row (D >= 128 ideally)."""
    x_in = x_ref[...]                       # (TILE, D) in input dtype
    xf = x_in.astype(jnp.float32)

    # Reductions always in f32.
    mean = jnp.mean(xf, axis=-1, keepdims=True)                      # (TILE, 1)
    centered = xf - mean
    var = jnp.sum(centered * centered, axis=-1, keepdims=True) * inv_dm1
    std = jnp.sqrt(var)
    # One reciprocal per row instead of a (TILE, D) divide; exact for bit parity.
    inv = pl.reciprocal(std + eps, approx=False)                     # (TILE, 1)

    if lowp_epilogue:
        # v6e/v7x: bf16-native VPU -> per-element epilogue in the input dtype.
        cd = x_in.dtype
        y = ((x_in - mean.astype(cd)) * inv.astype(cd)) * \
            gamma_ref[...].astype(cd) + beta_ref[...].astype(cd)
    else:
        y = (centered * inv) * gamma_ref[...].astype(jnp.float32) + \
            beta_ref[...].astype(jnp.float32)
    o_ref[...] = y.astype(o_ref.dtype)


def layernorm_packed_kernel(x_ref, gamma_ref, beta_ref, sum_ref, bcast_ref,
                            o_ref, *, eps, inv_d, inv_dm1):
    """Lane-dense path for small D: P = 128 // D logical rows packed per kernel
    row of width P*D = 128.  Segment sums / broadcasts run on the idle MXU."""
    x = x_ref[...].astype(jnp.float32)      # (TILE, P*D)
    seg_sum = sum_ref[...]                  # (P*D, P) 0/1 segment-indicator
    seg_bcast = bcast_ref[...]              # (P, P*D) its transpose

    # Per-segment mean, broadcast back to full width via MXU.
    row_sum = jnp.dot(x, seg_sum, preferred_element_type=jnp.float32)      # (TILE, P)
    mean_b = jnp.dot(row_sum * inv_d, seg_bcast,
                     preferred_element_type=jnp.float32)                   # (TILE, P*D)
    centered = x - mean_b

    # Two-pass (numerically matches the reference): sum of squared deviations.
    ssq = jnp.dot(centered * centered, seg_sum,
                  preferred_element_type=jnp.float32)                      # (TILE, P)
    var = jnp.maximum(ssq * inv_dm1, 0.0)
    inv = pl.reciprocal(jnp.sqrt(var) + eps, approx=False)                 # (TILE, P)
    inv_b = jnp.dot(inv, seg_bcast, preferred_element_type=jnp.float32)    # (TILE, P*D)

    # TODO(synk): bf16 epilogue could also be applied here on v6e/v7x.
    y = centered * inv_b * gamma_ref[...].astype(jnp.float32) + \
        beta_ref[...].astype(jnp.float32)
    o_ref[...] = y.astype(o_ref.dtype)


# --------------------------------------------------------------------------- #
# Wrapper helpers
# --------------------------------------------------------------------------- #
def _vmem_capacity_bytes():
    """Physical VMEM per TensorCore; conservative fallback if query fails."""
    try:
        return int(pltpu.get_tpu_info().vmem_capacity_bytes)
    except Exception:
        return 64 * 1024 * 1024  # v7x-sized conservative default


def _has_bf16_vpu():
    """bf16-native VPU (v6e and later). v2-v5 keep the all-f32 path."""
    try:
        kind = jax.devices()[0].device_kind.lower()
    except Exception:
        return False
    return not any(tag in kind for tag in ("v2", "v3", "v4", "v5"))


def _pick_row_tile(n_rows, d, in_itemsize, out_itemsize, block_budget_bytes):
    # Peak VMEM per tile row:
    #   double-buffered in/out blocks : 2 * d * (in + out)
    #   ~4 full-tile f32 intermediates: 4 * d * 4   (x_f32, centered, y, misc)
    per_row_bytes = 2 * d * (in_itemsize + out_itemsize) + 4 * d * 4
    tile = block_budget_bytes // max(per_row_bytes, 1)
    tile = min(tile, 512)          # HBM roofline saturates by ~512 rows
    tile = max(tile, 8)
    # Give the megacore "parallel" row axis >= 2 grid steps (v7x: 2 TCs).
    if n_rows >= 16:
        tile = min(tile, max(8, (n_rows // 2 // 8) * 8))
    # (8,128) sublane granularity, or full-dim block for tiny row counts.
    if n_rows < 8:
        return max(n_rows, 1)
    tile = min(tile, n_rows)
    return max(8, (tile // 8) * 8)


def _compiler_params(vmem_cap):
    return pltpu.CompilerParams(
        dimension_semantics=("parallel",),
        vmem_limit_bytes=min(vmem_cap // 2, 96 * 1024 * 1024),
    )


# --------------------------------------------------------------------------- #
# Public entry point
# --------------------------------------------------------------------------- #
def layer_norm(x, gamma, beta, eps=1e-5, row_tile=None):
    """x: (..., D). gamma, beta: (D,). Returns same shape/dtype as x."""
    orig_shape = x.shape
    d = orig_shape[-1]
    x2d = x.reshape(-1, d)
    n_rows = x2d.shape[0]

    itemsize = jnp.dtype(x.dtype).itemsize
    vmem_cap = _vmem_capacity_bytes()
    block_budget = vmem_cap // 4
    inv_dm1 = 1.0 / float(max(d - 1, 1))

    lowp_epilogue = (x.dtype in (jnp.bfloat16, jnp.float16)) and _has_bf16_vpu()

    # ------------------------------------------------------------------ #
    # Lane-dense packed path for small D (D < 128 and 128 % D == 0).
    # ------------------------------------------------------------------ #
    if d < 128 and 128 % d == 0 and (128 // d) >= 2:
        p = 128 // d
        pad_rows = (-n_rows) % p
        if pad_rows:
            x2d = jnp.pad(x2d, ((0, pad_rows), (0, 0)))
        n_packed = x2d.shape[0] // p
        xp = x2d.reshape(n_packed, p * d)           # free contiguous reshape
        gamma_p = jnp.tile(gamma.reshape(1, d).astype(jnp.float32), (1, p))
        beta_p = jnp.tile(beta.reshape(1, d).astype(jnp.float32), (1, p))
        lane_seg = jnp.arange(p * d, dtype=jnp.int32) // d
        seg_ids = jnp.arange(p, dtype=jnp.int32)
        sum_mat = (lane_seg[:, None] == seg_ids[None, :]).astype(jnp.float32)
        bcast_mat = sum_mat.T

        if row_tile is None:
            tile = _pick_row_tile(n_packed, p * d, itemsize, itemsize, block_budget)
        else:
            tile = max(1, min(row_tile, n_packed))
            if n_packed >= 8:
                tile = max(8, (tile // 8) * 8)

        grid = (pl.cdiv(n_packed, tile),)
        out = pl.pallas_call(
            functools.partial(layernorm_packed_kernel, eps=eps,
                              inv_d=1.0 / float(d), inv_dm1=inv_dm1),
            out_shape=jax.ShapeDtypeStruct((n_packed, p * d), x.dtype),
            grid_spec=pltpu.PrefetchScalarGridSpec(
                num_scalar_prefetch=0,
                grid=grid,
                in_specs=[
                    pl.BlockSpec((tile, p * d), lambda i: (i, 0)),
                    pl.BlockSpec((1, p * d), lambda i: (0, 0)),
                    pl.BlockSpec((1, p * d), lambda i: (0, 0)),
                    pl.BlockSpec((p * d, p), lambda i: (0, 0)),
                    pl.BlockSpec((p, p * d), lambda i: (0, 0)),
                ],
                out_specs=pl.BlockSpec((tile, p * d), lambda i: (i, 0)),
            ),
            compiler_params=_compiler_params(vmem_cap),
        )(xp, gamma_p, beta_p, sum_mat, bcast_mat)

        out = out.reshape(-1, d)
        if pad_rows:
            out = out[:n_rows]
        return out.reshape(orig_shape)

    # ------------------------------------------------------------------ #
    # General streaming path (D >= 128, ideally a multiple of 128).
    # ------------------------------------------------------------------ #
    # TODO(synk): for D >= 128 but not a multiple of 128 the output stores are
    # still masked (vst.msk); a lane-padding scheme would close that gap.
    if row_tile is None:
        tile = _pick_row_tile(n_rows, d, itemsize, itemsize, block_budget)
    else:
        tile = max(1, min(row_tile, n_rows))
        if n_rows >= 8:
            tile = max(8, (tile // 8) * 8)

    grid = (pl.cdiv(n_rows, tile),)
    gamma2d = gamma.reshape(1, d)
    beta2d = beta.reshape(1, d)

    out = pl.pallas_call(
        functools.partial(layernorm_kernel, eps=eps, inv_dm1=inv_dm1,
                          lowp_epilogue=lowp_epilogue),
        out_shape=jax.ShapeDtypeStruct((n_rows, d), x.dtype),
        grid_spec=pltpu.PrefetchScalarGridSpec(
            num_scalar_prefetch=0,
            grid=grid,
            in_specs=[
                pl.BlockSpec((tile, d), lambda i: (i, 0)),
                pl.BlockSpec((1, d), lambda i: (0, 0)),
                pl.BlockSpec((1, d), lambda i: (0, 0)),
            ],
            out_specs=pl.BlockSpec((tile, d), lambda i: (i, 0)),
        ),
        compiler_params=_compiler_params(vmem_cap),
    )(x2d, gamma2d, beta2d)

    return out.reshape(orig_shape)


# --------------------------------------------------------------------------- #
# Self-test
# --------------------------------------------------------------------------- #
if __name__ == "__main__":
    eps = 1e-5
    key = jax.random.PRNGKey(0)
    k1, k2 = jax.random.split(key)

    def ref_ln(x, gamma, beta, eps):
        mean = jnp.mean(x, axis=-1, keepdims=True)
        std = jnp.std(x, axis=-1, keepdims=True, ddof=1)   # unbiased, eps on std
        return gamma * (x - mean) / (std + eps) + beta

    # Case 1: module-sized shape (batch=2, seq=8, dim_model=32) -> packed path.
    batch, seq, dim_model = 2, 8, 32
    x = jax.random.normal(k1, (batch, seq, dim_model), dtype=jnp.float32)
    gamma = jnp.ones((dim_model,), dtype=jnp.float32)
    beta = jnp.zeros((dim_model,), dtype=jnp.float32)
    y = jax.block_until_ready(layer_norm(x, gamma, beta, eps=eps))
    ref = ref_ln(x, gamma, beta, eps)
    assert jnp.allclose(y, ref, atol=1e-5, rtol=1e-5), "packed-path mismatch"

    # Case 2: lane-aligned dim (D=128) -> simple streaming path, f32.
    dim2 = 128
    x2 = jax.random.normal(k2, (batch, seq, dim2), dtype=jnp.float32)
    g2 = jnp.ones((dim2,), dtype=jnp.float32)
    b2 = jnp.zeros((dim2,), dtype=jnp.float32)
    y2 = jax.block_until_ready(layer_norm(x2, g2, b2, eps=eps))
    ref2 = ref_ln(x2, g2, b2, eps)
    assert jnp.allclose(y2, ref2, atol=1e-5, rtol=1e-5), "streaming-path mismatch"

    # Case 3: bf16 input (bf16 epilogue on v6e/v7x, f32 path on v4/v5).
    x3 = x2.astype(jnp.bfloat16)
    y3 = jax.block_until_ready(layer_norm(x3, g2, b2, eps=eps))
    ref3 = ref_ln(x3.astype(jnp.float32), g2, b2, eps)
    assert jnp.allclose(y3.astype(jnp.float32), ref3, atol=7e-2, rtol=7e-2), \
        "bf16-path mismatch"

    print("KERNEL_OK")
</pallas_src>

<mosaic_0001>
module attributes {stable_mosaic.version = 11 : i64} {
  func.func @layernorm_packed_kernel(%arg0: i32, %arg1: memref<4x128xf32, #tpu.memory_space<vmem>>, %arg2: memref<1x128xf32, #tpu.memory_space<vmem>>, %arg3: memref<1x128xf32, #tpu.memory_space<vmem>>, %arg4: memref<128x4xf32, #tpu.memory_space<vmem>>, %arg5: memref<4x128xf32, #tpu.memory_space<vmem>>, %arg6: memref<4x128xf32, #tpu.memory_space<vmem>>) attributes {dimension_semantics = [#tpu.dimension_semantics<parallel>], iteration_bounds = array<i64: 1>, scalar_prefetch = 0 : i64, scratch_operands = 0 : i64, tpu.core_type = #tpu.core_type<tc>, window_params = [{transform_indices = @transform_0, window_bounds = array<i64: 4, 128>}, {pipeline_mode = #tpu.pipeline_mode<synchronous>, transform_indices = @transform_1, window_bounds = array<i64: 1, 128>}, {pipeline_mode = #tpu.pipeline_mode<synchronous>, transform_indices = @transform_2, window_bounds = array<i64: 1, 128>}, {pipeline_mode = #tpu.pipeline_mode<synchronous>, transform_indices = @transform_3, window_bounds = array<i64: 128, 4>}, {pipeline_mode = #tpu.pipeline_mode<synchronous>, transform_indices = @transform_4, window_bounds = array<i64: 4, 128>}, {transform_indices = @transform_5, window_bounds = array<i64: 4, 128>}]} {
    %c0 = arith.constant 0 : index
    %c0_0 = arith.constant 0 : index
    %0 = vector.load %arg1[%c0, %c0_0] : memref<4x128xf32, #tpu.memory_space<vmem>>, vector<4x128xf32>
    %c0_1 = arith.constant 0 : index
    %c0_2 = arith.constant 0 : index
    %1 = vector.load %arg4[%c0_1, %c0_2] : memref<128x4xf32, #tpu.memory_space<vmem>>, vector<128x4xf32>
    %c0_3 = arith.constant 0 : index
    %c0_4 = arith.constant 0 : index
    %2 = vector.load %arg5[%c0_3, %c0_4] : memref<4x128xf32, #tpu.memory_space<vmem>>, vector<4x128xf32>
    %cst = arith.constant dense<0.000000e+00> : vector<4x4xf32>
    %3 = tpu.matmul %0, %1, %cst {dimension_numbers = #tpu.dot_dimension_numbers<[1], [0], [0], [1], [0, 0, 1, 1], [], []>} : vector<4x128xf32>, vector<128x4xf32>, vector<4x4xf32> -> vector<4x4xf32>
    %cst_5 = arith.constant 3.125000e-02 : f32
    %4 = vector.broadcast %cst_5 : f32 to vector<4x4xf32>
    %5 = arith.mulf %3, %4 : vector<4x4xf32>
    %cst_6 = arith.constant dense<0.000000e+00> : vector<4x128xf32>
    %6 = tpu.matmul %5, %2, %cst_6 {dimension_numbers = #tpu.dot_dimension_numbers<[1], [0], [0], [1], [0, 0, 1, 1], [], []>} : vector<4x4xf32>, vector<4x128xf32>, vector<4x128xf32> -> vector<4x128xf32>
    %7 = arith.subf %0, %6 : vector<4x128xf32>
    %8 = arith.mulf %7, %7 : vector<4x128xf32>
    %cst_7 = arith.constant dense<0.000000e+00> : vector<4x4xf32>
    %9 = tpu.matmul %8, %1, %cst_7 {dimension_numbers = #tpu.dot_dimension_numbers<[1], [0], [0], [1], [0, 0, 1, 1], [], []>} : vector<4x128xf32>, vector<128x4xf32>, vector<4x4xf32> -> vector<4x4xf32>
    %cst_8 = arith.constant 0.0322580636 : f32
    %10 = vector.broadcast %cst_8 : f32 to vector<4x4xf32>
    %11 = arith.mulf %9, %10 : vector<4x4xf32>
    %cst_9 = arith.constant 0.000000e+00 : f32
    %12 = vector.broadcast %cst_9 : f32 to vector<4x4xf32>
    %13 = arith.maximumf %11, %12 : vector<4x4xf32>
    %14 = math.sqrt %13 : vector<4x4xf32>
    %cst_10 = arith.constant 9.99999974E-6 : f32
    %15 = vector.broadcast %cst_10 : f32 to vector<4x4xf32>
    %16 = arith.addf %14, %15 : vector<4x4xf32>
    %17 = tpu.reciprocal %16 : vector<4x4xf32> -> vector<4x4xf32>
    %cst_11 = arith.constant dense<0.000000e+00> : vector<4x128xf32>
    %18 = tpu.matmul %17, %2, %cst_11 {dimension_numbers = #tpu.dot_dimension_numbers<[1], [0], [0], [1], [0, 0, 1, 1], [], []>} : vector<4x4xf32>, vector<4x128xf32>, vector<4x128xf32> -> vector<4x128xf32>
    %19 = arith.mulf %7, %18 : vector<4x128xf32>
    %c0_12 = arith.constant 0 : index
    %c0_13 = arith.constant 0 : index
    %20 = vector.load %arg2[%c0_12, %c0_13] : memref<1x128xf32, #tpu.memory_space<vmem>>, vector<1x128xf32>
    %21 = vector.broadcast %20 : vector<1x128xf32> to vector<4x128xf32>
    %22 = arith.mulf %19, %21 : vector<4x128xf32>
    %c0_14 = arith.constant 0 : index
    %c0_15 = arith.constant 0 : index
    %23 = vector.load %arg3[%c0_14, %c0_15] : memref<1x128xf32, #tpu.memory_space<vmem>>, vector<1x128xf32>
    %24 = vector.broadcast %23 : vector<1x128xf32> to vector<4x128xf32>
    %25 = arith.addf %22, %24 : vector<4x128xf32>
    %c0_16 = arith.constant 0 : index
    %c0_17 = arith.constant 0 : index
    %26 = vector.load %arg6[%c0_16, %c0_17] : memref<4x128xf32, #tpu.memory_space<vmem>>, vector<4x128xf32>
    tpu.vector_store %arg6[%c0_16, %c0_17], %25 {strides = array<i32>} : memref<4x128xf32, #tpu.memory_space<vmem>>, vector<4x128xf32>,
    return
  }
  func.func @transform_0(%arg0: i32) -> (i32, i32) {
    %c0_i32 = arith.constant 0 : i32
    %c0_i32_0 = arith.constant 0 : i32
    return %arg0, %c0_i32 : i32, i32
  }
  func.func @transform_1(%arg0: i32) -> (i32, i32) {
    %c0_i32 = arith.constant 0 : i32
    %c0_i32_0 = arith.constant 0 : i32
    %c0_i32_1 = arith.constant 0 : i32
    return %c0_i32, %c0_i32_0 : i32, i32
  }
  func.func @transform_2(%arg0: i32) -> (i32, i32) {
    %c0_i32 = arith.constant 0 : i32
    %c0_i32_0 = arith.constant 0 : i32
    %c0_i32_1 = arith.constant 0 : i32
    return %c0_i32, %c0_i32_0 : i32, i32
  }
  func.func @transform_3(%arg0: i32) -> (i32, i32) {
    %c0_i32 = arith.constant 0 : i32
    %c0_i32_0 = arith.constant 0 : i32
    %c0_i32_1 = arith.constant 0 : i32
    return %c0_i32, %c0_i32_0 : i32, i32
  }
  func.func @transform_4(%arg0: i32) -> (i32, i32) {
    %c0_i32 = arith.constant 0 : i32
    %c0_i32_0 = arith.constant 0 : i32
    %c0_i32_1 = arith.constant 0 : i32
    return %c0_i32, %c0_i32_0 : i32, i32
  }
  func.func @transform_5(%arg0: i32) -> (i32, i32) {
    %c0_i32 = arith.constant 0 : i32
    %c0_i32_0 = arith.constant 0 : i32
    return %arg0, %c0_i32 : i32, i32
  }
}

</mosaic_0001>

<bundles_post_ra>
// kernel: tpu_custom_call.1
= control target key start
LH: loop header
LB: loop body
LE: loop exit
PB: predicated region body
PF: predicated region fallthrough
CT: control target
= control target key end

     0   :  { %v580_v3 = vmov 0.0|0.0   ;;  %vm581_vm0 = vmmov 0   ;;  %v582_v6 = vmov 0.0   ;;  %s708_s0 = inlined_call_operand.vmem [shape: f32[4,128], index: 0, kind: input, shape index: {}]   ;;  %s709_s1 = inlined_call_operand.vmem [shape: f32[1,128], index: 1, kind: input, shape index: {}]   ;;  %s710_s2 = inlined_call_operand.vmem [shape: f32[1,128], index: 2, kind: input, shape index: {}]   ;;  %s711_s3 = inlined_call_operand.vmem [shape: f32[128,4], index: 3, kind: input, shape index: {}]   ;;  %s712_s4 = inlined_call_operand.vmem [shape: f32[4,128], index: 4, kind: input, shape index: {}]   ;;  %s713_s5 = inlined_call_operand.hbm [shape: f32[4,128], index: 5, kind: output, shape index: {}]  }
   0x1   :  { %v22_v0 = vld [vmem:[%s711_s3] sm:$0xff]  ;;  %v23_v1 = vld [vmem:[%s711_s3 + $0x8] sm:$0xff]  ;;  %v24_v2 = vld [vmem:[%s711_s3 + $0x10] sm:$0xff]  ;;  %500 = vmatprep.subr.bf16.mxu0 %v580_v3  ;;  %452 = vmatprep.mubr.msk.f32.mxu0 %vm581_vm0, %v582_v6 }
   0x2   :  { %v501_v4 = vpack.c.bf16 %v23_v1, %v22_v0  ;;  %v25_v5 = vld [vmem:[%s711_s3 + $0x18] sm:$0xff]  ;;  %455 = vmatprep.subr.mxu1 %v582_v6  ;;  %457 = vmatprep.mubr.msk.f32.mxu1 %vm581_vm0, %v582_v6  ;;  %v26_v8 = vld [vmem:[%s711_s3 + $0x20] sm:$0xff]  ;;  %v27_v9 = vld [vmem:[%s711_s3 + $0x28] sm:$0xff] }
   0x3   :  { %v504_v7 = vpack.c.bf16 %v25_v5, %v24_v2 }
   0x4   :  { %502 = vmatpush3.bf16.msra.mxu0 %v501_v4 }
   0x5   :  { %503 = vmatprep.subr.bf16.mxu0 %v580_v3 }
   0x6   :  { %10 = vsyncpa [#allocation3], 0  ;;  %v507_v10 = vpack.c.bf16 %v27_v9, %v26_v8  ;;  %v28_v11 = vld [vmem:[%s711_s3 + $0x30] sm:$0xff]  ;;  %v29_v12 = vld [vmem:[%s711_s3 + $0x38] sm:$0xff]  ;;  %vm114_vm1 = vcmask 1043456   ;;  %vm110_vm2 = vcmask 31744  }
   0x7   :  { %v510_v13 = vpack.c.bf16 %v29_v12, %v28_v11  ;;  %v30_v14 = vld [vmem:[%s711_s3 + $0x40] sm:$0xff]  ;;  %v31_v15 = vld [vmem:[%s711_s3 + $0x48] sm:$0xff]  ;;  %v32_v17 = vld [vmem:[%s711_s3 + $0x50] sm:$0xff]  ;;  %s583_s30 = smov [#allocation2]  }
   0x8   :  { %505 = vmatpush3.bf16.msra.mxu0 %v504_v7  ;;  %v513_v16 = vpack.c.bf16 %v31_v15, %v30_v14  ;;  %v33_v18 = vld [vmem:[%s711_s3 + $0x58] sm:$0xff]  ;;  %v34_v20 = vld [vmem:[%s711_s3 + $0x60] sm:$0xff]  ;;  %v35_v21 = vld [vmem:[%s711_s3 + $0x68] sm:$0xff]  ;;  %s368_s6 = sshll.u32 %s583_s30, 4  ;;  %s369_s6 = int_to_ptr.vmem [resolvable:$true] %s368_s6 }
   0x9   :  { %506 = vmatprep.subr.bf16.mxu0 %v580_v3  ;;  %v516_v19 = vpack.c.bf16 %v33_v18, %v32_v17  ;;  %v519_v22 = vpack.c.bf16 %v35_v21, %v34_v20  ;;  %v36_v23 = vld [vmem:[%s711_s3 + $0x70] sm:$0xff]  ;;  %v37_v24 = vld [vmem:[%s711_s3 + $0x78] sm:$0xff]  ;;  %v21_v26 = vld [vmem:[%s708_s0] sm:$0xf]  ;;  %s556_s7 = scalar_lea.vmem %s369_s6, 64  ;;  %p561_p1 = scmp.lt.s32.totalorder %s369_s6, %s369_s6 }
   0xa   :  { %v522_v25 = vpack.c.bf16 %v37_v24, %v36_v23  ;;  %v38_v27 = vld [vmem:[%s712_s4] sm:$0xf]  ;;  %p557_p0 = scmp.ne.s32.totalorder %s369_s6, %s556_s7  ;;  %p562_p2 = scmp.lt.s32.totalorder %s556_s7, %s556_s7 }
   0xb   :  { %456 = vmatpush3.msk.msra.mxu1 %vm114_vm1, %v38_v27  ;;  %v380_v47 = vld [vmem:[%s709_s1] ss:$0 sm:$0xff] }
   0xc   :  { %508 = vmatpush3.bf16.msra.mxu0 %v507_v10  ;;  %524 = vmatprep.subr.bf16.mxu1 %v580_v3  ;;  %v381_v50 = vld [vmem:[%s710_s2] ss:$0 sm:$0xff]  ;;  %p563_p3 = por %p562_p2, %p561_p1 }
   0xd   :  { %509 = vmatprep.subr.bf16.mxu0 %v580_v3 }
   0xe   :  { %p564_p4 = pnand %p563_p3, %p557_p0 }
  0x10   :  { %511 = vmatpush3.bf16.msra.mxu0 %v510_v13 }
  0x11   :  { %512 = vmatprep.subr.bf16.mxu0 %v580_v3 }
  0x14   :  { %514 = vmatpush3.bf16.msra.mxu0 %v513_v16 }
  0x15   :  { %515 = vmatprep.subr.bf16.mxu0 %v580_v3 }
  0x18   :  { %517 = vmatpush3.bf16.msra.mxu0 %v516_v19 }
  0x19   :  { %518 = vmatprep.subr.bf16.mxu0 %v580_v3 }
  0x1c   :  { %520 = vmatpush3.bf16.msra.mxu0 %v519_v22 }
  0x1d   :  { %521 = vmatprep.subr.bf16.mxu0 %v580_v3 }
  0x20   :  { %523 = vmatpush3.bf16.msra.mxu0 %v522_v25 }
  0x21   :  { %495 = vmatprep.subr.mxu0 %v582_v6 }
  0x23   :  { %453 = vmatmul.mubr.f32.vlgmr.msra.gmra.mrb[0].mxu0 %v21_v26 }
  0x24   :  { %497 = vmatprep.mubr.msk.f32.mxu0 %vm581_vm0, %v582_v6  ;;  %496 = vmatpush3.msk.msra.mxu0 %vm114_vm1, %v38_v27 }
  0xf6   :  { %v105_v28 = vpop.f32.mrb[0].mxu0 }
  0xf7   :  { %v109_v29 = vmul.f32 0.03125, %v105_v28  ;;  %v454_v30 = vpop.f32.mrb[1].mxu0 }
  0xf9   :  { %458 = vmatmul.mubr.msk.f32.vlgmr.msra.gmra.mrb[0].mxu1 %vm110_vm2, %v109_v29 }
  0xfa   :  { %526 = vmatpush3.bf16.msra.mxu1 %v501_v4  ;;  %492 = vmatprep.mubr.msk.f32.mxu1 %vm581_vm0, %v582_v6 }
  0xfb   :  { %527 = vmatprep.subr.bf16.mxu1 %v580_v3 }
  0xfe   :  { %529 = vmatpush3.bf16.msra.mxu1 %v504_v7 }
  0xff   :  { %530 = vmatprep.subr.bf16.mxu1 %v580_v3 }
 0x102   :  { %532 = vmatpush3.bf16.msra.mxu1 %v507_v10 }
 0x103   :  { %533 = vmatprep.subr.bf16.mxu1 %v580_v3 }
 0x106   :  { %535 = vmatpush3.bf16.msra.mxu1 %v510_v13 }
 0x107   :  { %536 = vmatprep.subr.bf16.mxu1 %v580_v3 }
 0x10a   :  { %538 = vmatpush3.bf16.msra.mxu1 %v513_v16 }
 0x10b   :  { %539 = vmatprep.subr.bf16.mxu1 %v580_v3 }
 0x10e   :  { %541 = vmatpush3.bf16.msra.mxu1 %v516_v19 }
 0x10f   :  { %542 = vmatprep.subr.bf16.mxu1 %v580_v3 }
 0x112   :  { %544 = vmatpush3.bf16.msra.mxu1 %v519_v22 }
 0x113   :  { %545 = vmatprep.subr.bf16.mxu1 %v580_v3 }
 0x116   :  { %547 = vmatpush3.bf16.msra.mxu1 %v522_v25 }
 0x1cc   :  { %v184_v31 = vpop.f32.mrb[0].mxu1 }
 0x1cd   :  { %v188_v32 = vsub.f32 %v21_v26, %v184_v31  ;;  %v459_v33 = vpop.f32.mrb[1].mxu1 }
 0x1cf   :  { %v189_v34 = vmul.f32 %v188_v32, %v188_v32 }
 0x1d1   :  { %493 = vmatmul.mubr.f32.vlgmr.msra.gmra.mrb[2].mxu1 %v189_v34 }
 0x2a4   :  { %v256_v35 = vpop.f32.mrb[2].mxu1 }
 0x2a5   :  { %v260_v36 = vmul.f32 0.032258064, %v256_v35  ;;  %v494_v37 = vpop.f32.mrb[3].mxu1 }
 0x2a7   :  { %v261_v38 = vmax.f32 %v260_v36, 0.0 }
 0x2a9   :  { %552 = vrsqrt.f32 %v261_v38  ;;  %vm264_vm3 = vcmp.eq.f32.partialorder %v261_v38, inf  ;;  %v267_v41 = vand.u32 2147483648, %v261_v38  ;;  %vm266_vm4 = vcmp.eq.f32.partialorder %v261_v38, 0.0 }
 0x2b3   :  { %v553_v39 = vpop.eup %552 }
 0x2b4   :  { %v263_v40 = vmul.f32 %v553_v39, %v261_v38 }
 0x2b6   :  { %v265_v42 = vsel %vm264_vm3, %v261_v38, %v263_v40 }
 0x2b7   :  { %v268_v43 = vsel %vm266_vm4, %v267_v41, %v265_v42 }
 0x2b8   :  { %v269_v44 = vadd.f32 1e-05, %v268_v43 }
 0x2ba   :  { %554 = vrcp.f32 %v269_v44 }
 0x2c4   :  { %v555_v45 = vpop.eup %554 }
 0x2c5   :  { %498 = vmatmul.mubr.msk.f32.vlgmr.msra.gmra.mrb[2].mxu0 %vm110_vm2, %v555_v45 }
 0x398   :  { %v340_v46 = vpop.f32.mrb[2].mxu0 }
 0x399   :  { %v344_v48 = vmul.f32 %v340_v46, %v188_v32  ;;  %v499_v49 = vpop.f32.mrb[3].mxu0 }
 0x39b   :  { %v352_v51 = vmul.f32 %v380_v47, %v344_v48 }
 0x39d   :  { %v360_v52 = vadd.f32 %v381_v50, %v352_v51 }
 0x39f   :  { %361 = vst [vmem:[#allocation2] sm:$0xf] %v360_v52 }
 0x3a0   :  { %567 = shalt.err (!%p564_p4)
}
 0x3a1   :  { %s568_s9 = scalar_lea.hbm %s713_s5, 64 }
 0x3a2   :  { %p569_p5 = scmp.ne.s32.totalorder %s713_s5, %s568_s9  ;;  %p572_p6 = scmp.lt.u32.totalorder %s568_s9, %s713_s5 }
 0x3a4   :  { %p574_p7 = pnand %p572_p6, %p569_p5 }
 0x3a6   :  { %577 = shalt.err (!%p574_p7)
}
 0x3a7   :  { %371 = dma.vmem_to_hbm [thread:$0]  %s369_s6, 64, %s713_s5, [#allocation3]  }
 0x3a8   :  { %578 = dma.done.wait [#allocation3], 64  }
 0x3a9   :  { %579 = vsyncadd [#allocation3], 4294967232 }
 0x3aa   :  { %375 = vsyncpa [#allocation3], 1 }

</bundles_post_ra>
